<compile_context>
chip_gen: v5e
topology: v5e:2x2
jax: 0.10.0
libtpu: 0.0.40
codegen_flags: <defaults>
</compile_context>

<pallas_src>
import functools

import numpy as np
import jax
import jax.numpy as jnp
from jax.experimental import pallas as pl
from jax.experimental.pallas import tpu as pltpu


def _round_up(x: int, m: int) -> int:
    return ((x + m - 1) // m) * m


def _interp_matrix(n_knots: int, size: int, mode: str) -> np.ndarray:
    """Dense matrix W (n_knots, size) s.t. out = knots @ W matches
    torch.nn.functional.interpolate(knots[NCW], size=size, mode=mode)
    with PyTorch's default align_corners=False."""
    W = np.zeros((n_knots, size), dtype=np.float32)
    cols = np.arange(size)
    scale = n_knots / size
    if mode == "nearest":
        idx = np.minimum(np.floor(cols * scale).astype(np.int64), n_knots - 1)
        W[idx, cols] = 1.0
    elif mode == "linear":
        src = (cols + 0.5) * scale - 0.5
        src = np.maximum(src, 0.0)
        i0 = np.minimum(np.floor(src).astype(np.int64), n_knots - 1)
        i1 = np.minimum(i0 + 1, n_knots - 1)
        lam = np.clip(src - i0, 0.0, 1.0).astype(np.float32)
        np.add.at(W, (i0, cols), 1.0 - lam)
        np.add.at(W, (i1, cols), lam)
    else:
        # TODO(synk): bicubic interpolation path ('cubic' modes) not implemented.
        raise NotImplementedError(f"interpolation_mode={mode!r} not supported")
    return W


def _block_diag_permuted(W: np.ndarray, out_features: int, n_pad: int) -> np.ndarray:
    """Build W_big (out_features*n_knots, n_pad) with
    W_big[o*n_knots + k, f*out_features + o] = W[k, f], zero-padded columns."""
    n_knots, forecast_size = W.shape
    of = out_features * forecast_size
    W_big = np.zeros((out_features * n_knots, n_pad), dtype=np.float32)
    for o in range(out_features):
        # columns o, o+out_features, ... correspond to f = 0..forecast_size-1
        W_big[o * n_knots:(o + 1) * n_knots, o:of:out_features] = W
    return W_big


def _identity_basis_kernel(theta_ref, w_ref, backcast_ref, forecast_ref, *,
                           backcast_size: int):
    # Backcast is a plain copy of the leading theta columns; write it once per
    # batch tile (it is resident across the output-lane axis).
    @pl.when(pl.program_id(1) == 0)
    def _():
        backcast_ref[...] = theta_ref[:, :backcast_size]

    # (TB, K) @ (K, TN) -> (TB, TN): one MXU matmul per step, f32 accumulate.
    knots = theta_ref[:, backcast_size:]
    forecast_ref[...] = jnp.dot(
        knots, w_ref[...], preferred_element_type=jnp.float32
    ).astype(forecast_ref.dtype)


def identity_basis_forward(theta: jax.Array, *, backcast_size: int,
                           forecast_size: int, interpolation_mode: str,
                           out_features: int = 1):
    assert interpolation_mode in ("linear", "nearest") or "cubic" in interpolation_mode
    if "cubic" in interpolation_mode:
        # TODO(synk): cubic path (bicubic on a [B,1,1,K] tensor) not translated.
        raise NotImplementedError("cubic interpolation not implemented in Pallas port")

    B, T = theta.shape
    n_knots = (T - backcast_size) // out_features
    assert backcast_size + n_knots * out_features == T and n_knots > 0

    K = out_features * n_knots                       # contraction dim
    OF = out_features * forecast_size                # valid output lanes
    N_pad = _round_up(OF, 128)                       # W_big padded column count
    itemsize = jnp.dtype(theta.dtype).itemsize

    # Interpolation folded into a single matrix, in theta's dtype (native bf16
    # MXU pass when theta is bf16; accumulation stays f32).
    W = _interp_matrix(n_knots, forecast_size, interpolation_mode)
    W_big = jnp.asarray(_block_diag_permuted(W, out_features, N_pad),
                        dtype=theta.dtype)

    # Batch tile: guarantee >=2 grid steps when possible so the "parallel"
    # batch axis shards across v7x's two TensorCores; cap at 512 rows so the
    # double-buffered tiles stay far below the scoped VMEM limit.
    TB = min(B, 512, max(8, _round_up(pl.cdiv(B, 2), 8)))
    # Output-lane tile: multiple of 128, bounded so K*TN weight blocks stay
    # small even when out_features^2 * n_knots * forecast_size grows.
    TN = min(N_pad, 512)

    n_b = pl.cdiv(B, TB)
    n_n = pl.cdiv(N_pad, TN)
    grid = (n_b, n_n)

    # Single-buffer the weight operand when it is grid-invariant and big enough
    # for the VMEM saving to matter (default double-buffering otherwise).
    w_spec_kwargs = {}
    if n_n == 1 and (K * TN * itemsize) >= (1 << 20):
        w_spec_kwargs["pipeline_mode"] = pl.Buffered(buffer_count=1)
    w_buffers = 1 if "pipeline_mode" in w_spec_kwargs else 2

    # Explicit scoped-VMEM budget from the actual tile footprint (+ headroom).
    vmem_need = (2 * TB * T + w_buffers * K * TN + 2 * TB * TN
                 + 2 * TB * backcast_size) * itemsize + (1 << 20)
    vmem_limit = int(min(64 << 20, max(32 << 20, 2 * vmem_need)))

    backcast, forecast_flat = pl.pallas_call(
        functools.partial(_identity_basis_kernel, backcast_size=backcast_size),
        out_shape=(
            jax.ShapeDtypeStruct((B, backcast_size), theta.dtype),
            jax.ShapeDtypeStruct((B, OF), theta.dtype),
        ),
        grid=grid,
        in_specs=[
            # Whole theta row tile; constant across the lane axis -> fetched
            # once per batch tile (single HBM read of theta).
            pl.BlockSpec((TB, T), lambda i, j: (i, 0)),
            pl.BlockSpec((K, TN), lambda i, j: (0, j), **w_spec_kwargs),
        ],
        out_specs=[
            pl.BlockSpec((TB, backcast_size), lambda i, j: (i, 0)),
            pl.BlockSpec((TB, TN), lambda i, j: (i, j)),
        ],
        compiler_params=pltpu.CompilerParams(
            dimension_semantics=("parallel", "arbitrary"),
            vmem_limit_bytes=vmem_limit),
    )(theta, W_big)

    # Columns are laid out as f*out_features + o, so this reshape already
    # matches forecast.permute(0, 2, 1) with no transpose / copy pass.
    forecast = forecast_flat.reshape(B, forecast_size, out_features)
    return backcast, forecast


if __name__ == "__main__":
    # Small shapes consistent with the module: batch=8, backcast=16,
    # out_features=2, n_knots=8  =>  theta has 16 + 2*8 = 32 features.
    B = 8
    backcast_size = 16
    out_features = 2
    n_knots = 8
    forecast_size = 12

    key = jax.random.PRNGKey(0)
    theta = jax.random.normal(
        key, (B, backcast_size + out_features * n_knots), dtype=jnp.float32
    )

    for mode in ("linear", "nearest"):
        backcast, forecast = identity_basis_forward(
            theta,
            backcast_size=backcast_size,
            forecast_size=forecast_size,
            interpolation_mode=mode,
            out_features=out_features,
        )
        backcast = jax.block_until_ready(backcast)
        forecast = jax.block_until_ready(forecast)

        # Pure-JAX reference (same precomputed interpolation matrix).
        W_ref = jnp.asarray(_interp_matrix(n_knots, forecast_size, mode))
        knots = theta[:, backcast_size:].reshape(B, out_features, n_knots)
        ref_backcast = theta[:, :backcast_size]
        ref_forecast = jnp.einsum("bok,kf->bof", knots, W_ref).transpose(0, 2, 1)

        assert backcast.shape == (B, backcast_size)
        assert forecast.shape == (B, forecast_size, out_features)
        np.testing.assert_allclose(np.asarray(backcast), np.asarray(ref_backcast),
                                   rtol=1e-6, atol=1e-6)
        np.testing.assert_allclose(np.asarray(forecast), np.asarray(ref_forecast),
                                   rtol=1e-5, atol=1e-5)

    # bf16 path: W_big is cast to bf16 (native MXU pass), f32 accumulation.
    theta_bf16 = theta.astype(jnp.bfloat16)
    bc16, fc16 = identity_basis_forward(
        theta_bf16, backcast_size=backcast_size, forecast_size=forecast_size,
        interpolation_mode="linear", out_features=out_features)
    jax.block_until_ready(fc16)
    W_ref = jnp.asarray(_interp_matrix(n_knots, forecast_size, "linear"))
    knots32 = theta_bf16.astype(jnp.float32)[:, backcast_size:].reshape(
        B, out_features, n_knots)
    ref_fc = jnp.einsum("bok,kf->bof", knots32, W_ref).transpose(0, 2, 1)
    np.testing.assert_allclose(np.asarray(fc16, dtype=np.float32),
                               np.asarray(ref_fc), rtol=1e-1, atol=1e-1)

    print("KERNEL_OK")
</pallas_src>

<mosaic_0001>
module attributes {stable_mosaic.version = 11 : i64} {
  func.func @_identity_basis_kernel(%arg0: i32, %arg1: i32, %arg2: memref<8x32xf32, #tpu.memory_space<vmem>>, %arg3: memref<16x128xf32, #tpu.memory_space<vmem>>, %arg4: memref<8x16xf32, #tpu.memory_space<vmem>>, %arg5: memref<8x128xf32, #tpu.memory_space<vmem>>) attributes {dimension_semantics = [#tpu.dimension_semantics<parallel>, #tpu.dimension_semantics<arbitrary>], iteration_bounds = array<i64: 1, 1>, scalar_prefetch = 0 : i64, scratch_operands = 0 : i64, tpu.core_type = #tpu.core_type<tc>, window_params = [{transform_indices = @transform_0, window_bounds = array<i64: 8, 32>}, {transform_indices = @transform_1, window_bounds = array<i64: 16, 128>}, {transform_indices = @transform_2, window_bounds = array<i64: 8, 16>}, {transform_indices = @transform_3, window_bounds = array<i64: 8, 128>}]} {
    %c0_i32 = arith.constant 0 : i32
    %0 = arith.cmpi eq, %arg1, %c0_i32 : i32
    %1 = arith.extui %0 : i1 to i32
    %c0_i32_0 = arith.constant 0 : i32
    %2 = arith.cmpi ne, %1, %c0_i32_0 : i32
    scf.if %2 {
      %c0_5 = arith.constant 0 : index
      %c0_6 = arith.constant 0 : index
      %7 = vector.load %arg2[%c0_5, %c0_6] : memref<8x32xf32, #tpu.memory_space<vmem>>, vector<8x16xf32>
      %c0_7 = arith.constant 0 : index
      %c0_8 = arith.constant 0 : index
      %8 = vector.load %arg4[%c0_7, %c0_8] : memref<8x16xf32, #tpu.memory_space<vmem>>, vector<8x16xf32>
      tpu.vector_store %arg4[%c0_7, %c0_8], %7 {strides = array<i32>} : memref<8x16xf32, #tpu.memory_space<vmem>>, vector<8x16xf32>,
    } else {
    }
    %c0 = arith.constant 0 : index
    %c16 = arith.constant 16 : index
    %3 = vector.load %arg2[%c0, %c16] : memref<8x32xf32, #tpu.memory_space<vmem>>, vector<8x16xf32>
    %c0_1 = arith.constant 0 : index
    %c0_2 = arith.constant 0 : index
    %4 = vector.load %arg3[%c0_1, %c0_2] : memref<16x128xf32, #tpu.memory_space<vmem>>, vector<16x128xf32>
    %cst = arith.constant dense<0.000000e+00> : vector<8x128xf32>
    %5 = tpu.matmul %3, %4, %cst {dimension_numbers = #tpu.dot_dimension_numbers<[1], [0], [0], [1], [0, 0, 1, 1], [], []>} : vector<8x16xf32>, vector<16x128xf32>, vector<8x128xf32> -> vector<8x128xf32>
    %c0_3 = arith.constant 0 : index
    %c0_4 = arith.constant 0 : index
    %6 = vector.load %arg5[%c0_3, %c0_4] : memref<8x128xf32, #tpu.memory_space<vmem>>, vector<8x128xf32>
    tpu.vector_store %arg5[%c0_3, %c0_4], %5 {strides = array<i32>} : memref<8x128xf32, #tpu.memory_space<vmem>>, vector<8x128xf32>,
    return
  }
  func.func @transform_0(%arg0: i32, %arg1: i32) -> (i32, i32) {
    %c0_i32 = arith.constant 0 : i32
    %c0_i32_0 = arith.constant 0 : i32
    return %arg0, %c0_i32 : i32, i32
  }
  func.func @transform_1(%arg0: i32, %arg1: i32) -> (i32, i32) {
    %c0_i32 = arith.constant 0 : i32
    %c0_i32_0 = arith.constant 0 : i32
    return %c0_i32, %arg1 : i32, i32
  }
  func.func @transform_2(%arg0: i32, %arg1: i32) -> (i32, i32) {
    %c0_i32 = arith.constant 0 : i32
    %c0_i32_0 = arith.constant 0 : i32
    return %arg0, %c0_i32 : i32, i32
  }
  func.func @transform_3(%arg0: i32, %arg1: i32) -> (i32, i32) {
    %c0_i32 = arith.constant 0 : i32
    return %arg0, %arg1 : i32, i32
  }
}

</mosaic_0001>

<bundles_post_ra>
// kernel: tpu_custom_call.1
= control target key start
LH: loop header
LB: loop body
LE: loop exit
PB: predicated region body
PF: predicated region fallthrough
CT: control target
= control target key end

     0   :  { %9 = vsyncpa [#allocation3], 0  ;;  %s267_s0 = inlined_call_operand.hbm [shape: f32[8,32], index: 0, kind: input, shape index: {}]   ;;  %s268_s1 = inlined_call_operand.hbm [shape: f32[16,128], index: 1, kind: input, shape index: {}]   ;;  %s269_s2 = inlined_call_operand.hbm [shape: f32[8,16], index: 2, kind: output, shape index: {0}]   ;;  %s270_s3 = inlined_call_operand.hbm [shape: f32[8,24], index: 3, kind: output, shape index: {1}]  }
   0x1   :  { %10 = vsyncpa [#allocation6], 0 }
   0x2   :  { %11 = vsyncpa [#allocation4], 0 }
   0x3   :  { %12 = vsyncpa [#allocation9], 0  ;;  %s18_s14 = sshll.u32 %s267_s0, 4  ;;  %s228_s15 = smov [#allocation2]   ;;  %s19_s14 = int_to_ptr.hbm [resolvable:$true] %s18_s14 }
   0x4   :  { %s20_s16 = sshll.u32 %s228_s15, 4  ;;  %s28_s19 = sshll.u32 %s268_s1, 4  ;;  %s21_s16 = int_to_ptr.vmem [resolvable:$true] %s20_s16  ;;  %s29_s19 = int_to_ptr.hbm [resolvable:$true] %s28_s19 }
   0x5   :  { %23 = dma.hbm_to_vmem [thread:$0]  %s19_s14, 128, %s21_s16, [#allocation3]  }
   0x6   :  { %s229_s20 = smov [#allocation5]   ;;  %s230_s22 = smov 128  }
   0x7   :  { %s30_s21 = sshll.u32 %s229_s20, 4  ;;  %s231_s23 = smov 8   ;;  %s31_s21 = int_to_ptr.vmem [resolvable:$true] %s30_s21 }
   0x8   :  { %36 = dma.hbm_to_vmem [thread:$0]  %s29_s19, 256, %s31_s21, [#allocation6], %s230_s22, %s230_s22, %s231_s23  }
   0x9   :  { %220 = dma.done.wait [#allocation3], 128  }
   0xa   :  { %221 = vsyncadd [#allocation3], 4294967168 }
   0xb   :  { %222 = dma.done.wait [#allocation6], 256  }
   0xc   :  { %223 = vsyncadd [#allocation6], 4294967040  ;;  %v52_v0 = vld [vmem:[#allocation2] sm:$0xff]  ;;  %v54_v1 = vld [vmem:[#allocation5 + $0x8] sm:$0xff]  ;;  %s232_s0 = smov 112   ;;  %vm50_vm0 = vcmask 130048  }
   0xd   :  { %56 = vrot.lane.b32.xlu0 %v52_v0, %s232_s0  ;;  %75 = vmatpush.msra.mxu0 %v54_v1  ;;  %v53_v2 = vld [vmem:[#allocation5] sm:$0xff]  ;;  %51 = vst.msk [vmem:[#allocation7] sm:$0xff] %vm50_vm0, %v52_v0  ;;  %s233_s1 = smov [#allocation7]   ;;  %s89_s27 = sshll.u32 %s269_s2, 4  ;;  %s90_s27 = int_to_ptr.hbm [resolvable:$true] %s89_s27 }
   0xe   :  { %s87_s24 = sshll.u32 %s233_s1, 4  ;;  %s234_s28 = smov [#allocation8]   ;;  %s88_s24 = int_to_ptr.vmem [resolvable:$true] %s87_s24 }
   0xf   :  { %76 = vmatpush.msra.mxu0 %v53_v2  ;;  %92 = dma.vmem_to_hbm [thread:$0]  %s88_s24, 128, %s90_s27, [#allocation4]  }
  0x10   :  { %s98_s29 = sshll.u32 %s234_s28, 4  ;;  %s100_s5 = sshll.u32 %s270_s3, 4  ;;  %s99_s29 = int_to_ptr.vmem [resolvable:$true] %s98_s29  ;;  %s101_s5 = int_to_ptr.hbm [resolvable:$true] %s100_s5 }
  0x7f   :  { %v57_v3 = vpop.permute.xlu0 %56 }
  0x80   :  { %116 = vmatmul.msk.f32.vlgmr.msra.gmra.mxu0 %vm50_vm0, %v57_v3 }
  0xfd   :  { %v78_v4 = vpop.f32.mrf.mxu0 }
  0xfe   :  { %81 = vst [vmem:[#allocation8] sm:$0xff] %v78_v4 }
  0xff   :  { %103 = dma.vmem_to_hbm [thread:$0]  %s99_s29, 128, %s101_s5, [#allocation9]  }
 0x100   :  { %224 = dma.done.wait [#allocation4], 128  }
 0x101   :  { %225 = vsyncadd [#allocation4], 4294967168 }
 0x102   :  { %226 = dma.done.wait [#allocation9], 128  }
 0x103   :  { %227 = vsyncadd [#allocation9], 4294967168 }
 0x104   :  { %112 = vsyncpa [#allocation3], 1 }
 0x105   :  { %113 = vsyncpa [#allocation6], 1 }
 0x106   :  { %114 = vsyncpa [#allocation4], 1 }
 0x107   :  { %115 = vsyncpa [#allocation9], 1 }

</bundles_post_ra>
